<compile_context>
chip_gen: v7x
topology: tpu7x:2x2x1
jax: 0.10.0
libtpu: 0.0.40
codegen_flags: <defaults>
</compile_context>

<pallas_src>
import math

import jax
import jax.numpy as jnp
from jax.experimental import pallas as pl
from jax.experimental.pallas import tpu as pltpu

SCALE_ONE = 1.0 / math.sqrt(2.0)

_LANE = 128
_SUBLANE = 8


def _round_up(x: int, m: int) -> int:
    return ((x + m - 1) // m) * m


def _fc_head_kernel(x_ref, w_ref, b_ref, mean_ref):
    # x_ref:    [block_b, dim_in]
    # w_ref:    [dim_in, tn]
    # b_ref:    [1, tn]
    # mean_ref: [block_b, tn]
    acc = jnp.dot(x_ref[...], w_ref[...], preferred_element_type=jnp.float32)
    mean_ref[...] = (acc + b_ref[...]).astype(mean_ref.dtype)


def _choose_tiles(batch: int, dim_in: int, n_pad: int, dtype_bytes: int):
    """Pick (block_b, tn) tiles that fit a conservative VMEM budget."""
    # N tile: a multiple of 128 (<= 512) that divides n_pad.
    if n_pad <= 512:
        tn = n_pad
    elif n_pad % 512 == 0:
        tn = 512
    elif n_pad % 256 == 0:
        tn = 256
    else:
        tn = _LANE

    budget = 8 * 1024 * 1024  # bytes for double-buffered tiles (v7x-safe)

    def tiles_bytes(bb: int, tn_: int) -> int:
        per_buf = dtype_bytes * (bb * dim_in + dim_in * tn_ + tn_ + bb * tn_)
        return 2 * per_buf + 4 * bb * tn_  # + f32 accumulator headroom

    block_b = min(512, _round_up(batch, _SUBLANE))
    while tiles_bytes(block_b, tn) > budget and block_b > _SUBLANE:
        block_b = max(_SUBLANE, _round_up(block_b // 2, _SUBLANE))
    if tiles_bytes(block_b, tn) > budget:
        tn = _LANE  # always divides n_pad
    return block_b, tn, tiles_bytes(block_b, tn)


def fc_deterministic_normal_head(
    x,
    weight,
    bias,
    std: float = SCALE_ONE,
    squeeze_feature_dim: bool = False,
):
    """Returns (mean, std) arrays, matching FCDeterministicNormalHead.forward.

    DeterministicNormal.sample()/rsample() is just `mean`, so the pair
    (mean, std) fully determines the returned distribution.
    """
    dim_out, dim_in_w = weight.shape
    *lead, dim_in = x.shape
    if dim_in != dim_in_w:
        raise ValueError(f"dim_in mismatch: x has {dim_in}, weight expects {dim_in_w}")
    if squeeze_feature_dim and dim_out != 1:
        raise ValueError("Can not squeeze feature dimension!")

    xb = x.reshape(-1, dim_in)
    B = xb.shape[0]

    n_pad = _round_up(dim_out, _LANE)
    dtype_bytes = jnp.dtype(x.dtype).itemsize
    block_b, tn, tile_bytes = _choose_tiles(B, dim_in, n_pad, dtype_bytes)

    # Lane-dense weight/bias: zero-pad the out-feature dim up to n_pad.
    w_t = weight.T.astype(x.dtype)                     # [dim_in, dim_out]
    b_p = bias.astype(x.dtype)
    if n_pad != dim_out:
        w_t = jnp.pad(w_t, ((0, 0), (0, n_pad - dim_out)))
        b_p = jnp.pad(b_p, ((0, n_pad - dim_out),))
    b_p = b_p.reshape(1, n_pad)

    grid = (pl.cdiv(B, block_b), n_pad // tn)

    cost = pl.CostEstimate(
        flops=2 * B * dim_in * n_pad,
        transcendentals=0,
        bytes_accessed=dtype_bytes * (B * dim_in + dim_in * n_pad + n_pad + B * n_pad),
    )
    vmem_limit = int(min(max(tile_bytes + (4 << 20), 16 << 20), 32 << 20))

    mean_pad = pl.pallas_call(
        _fc_head_kernel,
        out_shape=jax.ShapeDtypeStruct((B, n_pad), x.dtype),
        grid_spec=pltpu.PrefetchScalarGridSpec(
            num_scalar_prefetch=0,
            grid=grid,
            in_specs=[
                pl.BlockSpec((block_b, dim_in), lambda i, j: (i, 0)),
                pl.BlockSpec((dim_in, tn), lambda i, j: (0, j)),
                pl.BlockSpec((1, tn), lambda i, j: (0, j)),
            ],
            out_specs=pl.BlockSpec((block_b, tn), lambda i, j: (i, j)),
        ),
        compiler_params=pltpu.CompilerParams(
            dimension_semantics=("parallel", "parallel"),
            vmem_limit_bytes=vmem_limit,
        ),
        cost_estimate=cost,
    )(xb, w_t, b_p)

    mean = mean_pad[:, :dim_out].reshape(*lead, dim_out)
    if squeeze_feature_dim:
        mean = jnp.squeeze(mean, axis=-1)
    # Constant std: plain XLA fill (fuses downstream), no kernel store traffic.
    std_arr = jnp.full(mean.shape, jnp.asarray(std, mean.dtype), mean.dtype)
    return mean, std_arr


def deterministic_normal_sample(mean, std):
    # DeterministicNormal.sample() / rsample() with empty sample_shape -> mean.
    del std
    return mean


if __name__ == "__main__":
    # Small shapes implied by the module: x: [batch, seq, dim_in]
    batch, seq, dim_in, dim_out = 2, 8, 32, 16

    key = jax.random.PRNGKey(0)
    kx, kw, kb = jax.random.split(key, 3)

    # nn.Linear default init: U(-1/sqrt(dim_in), 1/sqrt(dim_in)).
    bound = 1.0 / math.sqrt(dim_in)
    weight = jax.random.uniform(kw, (dim_out, dim_in), jnp.float32, -bound, bound)
    bias = jax.random.uniform(kb, (dim_out,), jnp.float32, -bound, bound)
    x = jax.random.normal(kx, (batch, seq, dim_in), jnp.float32)

    mean, std = fc_deterministic_normal_head(x, weight, bias, std=SCALE_ONE)
    mean = jax.block_until_ready(mean)
    std = jax.block_until_ready(std)

    # Reference check (plain JAX).
    ref_mean = x @ weight.T + bias
    assert mean.shape == (batch, seq, dim_out)
    assert std.shape == (batch, seq, dim_out)
    assert jnp.allclose(mean, ref_mean, atol=1e-5, rtol=1e-5)
    assert jnp.allclose(std, jnp.full_like(ref_mean, SCALE_ONE))
    sample = deterministic_normal_sample(mean, std)
    assert jnp.array_equal(sample, mean)

    # squeeze_feature_dim=True path (dim_out == 1).
    w1 = jax.random.uniform(kw, (1, dim_in), jnp.float32, -bound, bound)
    b1 = jax.random.uniform(kb, (1,), jnp.float32, -bound, bound)
    mean1, std1 = fc_deterministic_normal_head(
        x, w1, b1, std=SCALE_ONE, squeeze_feature_dim=True
    )
    mean1 = jax.block_until_ready(mean1)
    std1 = jax.block_until_ready(std1)
    ref1 = (x @ w1.T + b1)[..., 0]
    assert mean1.shape == (batch, seq)
    assert std1.shape == (batch, seq)
    assert jnp.allclose(mean1, ref1, atol=1e-5, rtol=1e-5)
    assert jnp.allclose(std1, jnp.full_like(ref1, SCALE_ONE))

    print("KERNEL_OK")
</pallas_src>

<mosaic_0001>
module attributes {stable_mosaic.version = 11 : i64} {
  func.func @_fc_head_kernel(%arg0: i32, %arg1: i32, %arg2: memref<16x32xf32, #tpu.memory_space<vmem>>, %arg3: memref<32x128xf32, #tpu.memory_space<vmem>>, %arg4: memref<1x128xf32, #tpu.memory_space<vmem>>, %arg5: memref<16x128xf32, #tpu.memory_space<vmem>>) attributes {dimension_semantics = [#tpu.dimension_semantics<parallel>, #tpu.dimension_semantics<parallel>], iteration_bounds = array<i64: 1, 1>, scalar_prefetch = 0 : i64, scratch_operands = 0 : i64, tpu.core_type = #tpu.core_type<tc>, window_params = [{transform_indices = @transform_0, window_bounds = array<i64: 16, 32>}, {transform_indices = @transform_1, window_bounds = array<i64: 32, 128>}, {transform_indices = @transform_2, window_bounds = array<i64: 1, 128>}, {transform_indices = @transform_3, window_bounds = array<i64: 16, 128>}]} {
    %c0 = arith.constant 0 : index
    %c0_0 = arith.constant 0 : index
    %0 = vector.load %arg2[%c0, %c0_0] : memref<16x32xf32, #tpu.memory_space<vmem>>, vector<16x32xf32>
    %c0_1 = arith.constant 0 : index
    %c0_2 = arith.constant 0 : index
    %1 = vector.load %arg3[%c0_1, %c0_2] : memref<32x128xf32, #tpu.memory_space<vmem>>, vector<32x128xf32>
    %cst = arith.constant dense<0.000000e+00> : vector<16x128xf32>
    %2 = tpu.matmul %0, %1, %cst {dimension_numbers = #tpu.dot_dimension_numbers<[1], [0], [0], [1], [0, 0, 1, 1], [], []>} : vector<16x32xf32>, vector<32x128xf32>, vector<16x128xf32> -> vector<16x128xf32>
    %c0_3 = arith.constant 0 : index
    %c0_4 = arith.constant 0 : index
    %3 = vector.load %arg4[%c0_3, %c0_4] : memref<1x128xf32, #tpu.memory_space<vmem>>, vector<1x128xf32>
    %4 = vector.broadcast %3 : vector<1x128xf32> to vector<16x128xf32>
    %5 = arith.addf %2, %4 : vector<16x128xf32>
    %c0_5 = arith.constant 0 : index
    %c0_6 = arith.constant 0 : index
    %6 = vector.load %arg5[%c0_5, %c0_6] : memref<16x128xf32, #tpu.memory_space<vmem>>, vector<16x128xf32>
    tpu.vector_store %arg5[%c0_5, %c0_6], %5 {strides = array<i32>} : memref<16x128xf32, #tpu.memory_space<vmem>>, vector<16x128xf32>,
    return
  }
  func.func @transform_0(%arg0: i32, %arg1: i32) -> (i32, i32) {
    %c0_i32 = arith.constant 0 : i32
    %c0_i32_0 = arith.constant 0 : i32
    return %arg0, %c0_i32 : i32, i32
  }
  func.func @transform_1(%arg0: i32, %arg1: i32) -> (i32, i32) {
    %c0_i32 = arith.constant 0 : i32
    %c0_i32_0 = arith.constant 0 : i32
    return %c0_i32, %arg1 : i32, i32
  }
  func.func @transform_2(%arg0: i32, %arg1: i32) -> (i32, i32) {
    %c0_i32 = arith.constant 0 : i32
    %c0_i32_0 = arith.constant 0 : i32
    return %c0_i32, %arg1 : i32, i32
  }
  func.func @transform_3(%arg0: i32, %arg1: i32) -> (i32, i32) {
    %c0_i32 = arith.constant 0 : i32
    return %arg0, %arg1 : i32, i32
  }
}

</mosaic_0001>

<bundles_post_ra>
// kernel: tpu_custom_call.1
= control target key start
LH: loop header
LB: loop body
LE: loop exit
PB: predicated region body
PF: predicated region fallthrough
CT: control target
= control target key end

     0   :  { %8 = vsyncpa [#allocation3], 0  ;;  %s336_s0 = inlined_call_operand.hbm [shape: f32[16,32], index: 0, kind: input, shape index: {}]   ;;  %s337_s1 = inlined_call_operand.hbm [shape: f32[32,128], index: 1, kind: input, shape index: {}]   ;;  %s338_s2 = inlined_call_operand.vmem [shape: f32[1,128], index: 2, kind: input, shape index: {}]   ;;  %s339_s3 = inlined_call_operand.hbm [shape: f32[16,128], index: 3, kind: output, shape index: {}]  }
   0x1   :  { %9 = vsyncpa [#allocation6], 0 }
   0x2   :  { %10 = vsyncpa [#allocation4], 0  ;;  %s263_s12 = smov [#allocation2]   ;;  %s191_s16 = scalar_lea.hbm %s336_s0, 256 }
   0x3   :  { %s16_s13 = sshll.u32 %s263_s12, 4  ;;  %p192_p0 = scmp.ne.s32.totalorder %s336_s0, %s191_s16  ;;  %s17_s13 = int_to_ptr.vmem [resolvable:$true] %s16_s13 }
   0x4   :  { %p195_p1 = scmp.lt.u32.totalorder %s191_s16, %s336_s0 }
   0x6   :  { %p197_p2 = pnand %p195_p1, %p192_p0 }
   0x8   :  { %200 = shalt.err (!%p197_p2)
}
   0x9   :  { %s201_s21 = scalar_lea.vmem %s17_s13, 256  ;;  %p206_p4 = scmp.lt.s32.totalorder %s17_s13, %s17_s13 }
   0xa   :  { %p202_p3 = scmp.ne.s32.totalorder %s17_s13, %s201_s21  ;;  %p207_p5 = scmp.lt.s32.totalorder %s201_s21, %s201_s21 }
   0xc   :  { %p208_p6 = por %p207_p5, %p206_p4 }
   0xe   :  { %p209_p7 = pnand %p208_p6, %p202_p3 }
  0x10   :  { %212 = shalt.err (!%p209_p7)
}
  0x11   :  { %s264_s22 = smov 128   ;;  %s265_s23 = smov 8  }
  0x12   :  { %22 = dma.hbm_to_vmem [thread:$0]  %s336_s0, 256, %s17_s13, [#allocation3], %s264_s22, %s264_s22, %s265_s23  }
  0x13   :  { %s266_s26 = smov [#allocation5]   ;;  %s213_s30 = scalar_lea.hbm %s337_s1, 512 }
  0x14   :  { %s28_s27 = sshll.u32 %s266_s26, 4  ;;  %p214_p8 = scmp.ne.s32.totalorder %s337_s1, %s213_s30  ;;  %s29_s27 = int_to_ptr.vmem [resolvable:$true] %s28_s27 }
  0x15   :  { %p217_p9 = scmp.lt.u32.totalorder %s213_s30, %s337_s1 }
  0x17   :  { %p219_p10 = pnand %p217_p9, %p214_p8 }
  0x19   :  { %222 = shalt.err (!%p219_p10)
}
  0x1a   :  { %s223_s8 = scalar_lea.vmem %s29_s27, 512  ;;  %p228_p12 = scmp.lt.s32.totalorder %s29_s27, %s29_s27 }
  0x1b   :  { %p224_p11 = scmp.ne.s32.totalorder %s29_s27, %s223_s8  ;;  %p229_p13 = scmp.lt.s32.totalorder %s223_s8, %s223_s8 }
  0x1d   :  { %p230_p0 = por %p229_p13, %p228_p12 }
  0x1f   :  { %p231_p1 = pnand %p230_p0, %p224_p11 }
  0x21   :  { %234 = shalt.err (!%p231_p1)
}
  0x22   :  { %34 = dma.hbm_to_vmem [thread:$0]  %s337_s1, 512, %s29_s27, [#allocation6], %s264_s22, %s264_s22, %s265_s23  }
  0x23   :  { %257 = dma.done.wait [#allocation3], 256  }
  0x24   :  { %258 = vsyncadd [#allocation3], 4294967040 }
  0x25   :  { %259 = dma.done.wait [#allocation6], 512  }
  0x26   :  { %260 = vsyncadd [#allocation6], 4294966784  ;;  %vm56_vm0 = vcmask 261120   ;;  %v45_v0 = vld [vmem:[#allocation5] sm:$0xff]  ;;  %v46_v1 = vld [vmem:[#allocation5 + $0x8] sm:$0xff]  ;;  %s267_s11 = smov [#allocation7]  }
  0x27   :  { %v47_v2 = vld [vmem:[#allocation5 + $0x10] sm:$0xff]  ;;  %v178_v3 = vpack.c.bf16 %v46_v1, %v45_v0  ;;  %v48_v4 = vld [vmem:[#allocation5 + $0x18] sm:$0xff]  ;;  %s145_s12 = sshll.u32 %s267_s11, 4  ;;  %s146_s12 = int_to_ptr.vmem [resolvable:$true] %s145_s12 }
  0x28   :  { %v43_v5 = vld [vmem:[#allocation2] sm:$0xff]  ;;  %v182_v6 = vpack.c.bf16 %v48_v4, %v47_v2  ;;  %v44_v7 = vld [vmem:[#allocation2 + $0x8] sm:$0xff]  ;;  %s235_s13 = scalar_lea.vmem %s146_s12, 256  ;;  %p240_p3 = scmp.lt.s32.totalorder %s146_s12, %s146_s12 }
  0x29   :  { %175 = vmatprep.mubr.msk.f32.mxu0 %vm56_vm0, %v43_v5  ;;  %179 = vmatprep.subr.bf16.mxu0 %v178_v3  ;;  %v158_v8 = vld [vmem:[%s338_s2] ss:$0 sm:$0xff]  ;;  %p236_p2 = scmp.ne.s32.totalorder %s146_s12, %s235_s13  ;;  %p241_p4 = scmp.lt.s32.totalorder %s235_s13, %s235_s13 }
  0x2a   :  { %181 = vmatpush3.bf16.msra.mxu0 %v178_v3 }
  0x2b   :  { %183 = vmatprep.subr.bf16.mxu0 %v182_v6  ;;  %p242_p5 = por %p241_p4, %p240_p3 }
  0x2d   :  { %p243_p6 = pnand %p242_p5, %p236_p2 }
  0x2e   :  { %185 = vmatpush3.bf16.msra.mxu0 %v182_v6 }
  0x31   :  { %176 = vmatmul.mubr.msk.f32.vlgmr.msra.gmra.mrb[0].mxu0 %vm56_vm0, %v44_v7 }
 0x104   :  { %v177_v9 = vpop.f32.mrb[0].mxu0 }
 0x105   :  { %v135_v10 = vadd.f32 %v177_v9, %v158_v8  ;;  %v129_v11 = vpop.f32.mrb[1].mxu0 }
 0x106   :  { %v130_v12 = vadd.f32 %v158_v8, %v129_v11 }
 0x107   :  { %139 = vst [vmem:[#allocation7 + $0x8] sm:$0xff] %v135_v10 }
 0x108   :  { %138 = vst [vmem:[#allocation7] sm:$0xff] %v130_v12 }
 0x109   :  { %246 = shalt.err (!%p243_p6)
}
 0x10a   :  { %s247_s2 = scalar_lea.hbm %s339_s3, 256 }
 0x10b   :  { %p248_p7 = scmp.ne.s32.totalorder %s339_s3, %s247_s2  ;;  %p251_p8 = scmp.lt.u32.totalorder %s247_s2, %s339_s3 }
 0x10d   :  { %p253_p9 = pnand %p251_p8, %p248_p7 }
 0x10f   :  { %256 = shalt.err (!%p253_p9)
}
 0x110   :  { %151 = dma.vmem_to_hbm [thread:$0]  %s146_s12, 256, %s339_s3, [#allocation4], %s264_s22, %s264_s22, %s265_s23  }
 0x111   :  { %261 = dma.done.wait [#allocation4], 256  }
 0x112   :  { %262 = vsyncadd [#allocation4], 4294967040 }
 0x113   :  { %155 = vsyncpa [#allocation3], 1 }
 0x114   :  { %156 = vsyncpa [#allocation6], 1 }
 0x115   :  { %157 = vsyncpa [#allocation4], 1 }

</bundles_post_ra>
